<compile_context>
chip_gen: v5e
topology: v5e:2x2
jax: 0.10.0
libtpu: 0.0.40
codegen_flags: <defaults>
</compile_context>

<pallas_src>
import functools
import jax
import jax.numpy as jnp
from jax.experimental import pallas as pl
from jax.experimental.pallas import tpu as pltpu


_VMEM_LIMIT = 48 * 1024 * 1024   # safe on v5e/v6e (128 MiB) and v7x (64 MiB)


def _round_up(x, m):
    return (x + m - 1) // m * m


def _apply_act(y, act):
    if act == "relu":
        return jnp.maximum(y, 0.0)
    if act == "leaky":
        return jnp.where(y > 0, y, 0.01 * y)
    return y


# ---------------------------------------------------------------------------
# Fused tiled matmul + BN(affine) [+ residual] + activation
# ---------------------------------------------------------------------------
def _mm_kernel(x_ref, w_ref, s_ref, b_ref, o_ref, acc_ref, *, act):
    k = pl.program_id(2)

    @pl.when(k == 0)
    def _():
        acc_ref[...] = jnp.zeros_like(acc_ref)

    acc_ref[...] += jnp.dot(x_ref[...], w_ref[...],
                            preferred_element_type=jnp.float32)

    @pl.when(k == pl.num_programs(2) - 1)
    def _():
        y = acc_ref[...] * s_ref[...] + b_ref[...]
        o_ref[...] = _apply_act(y, act).astype(o_ref.dtype)


def _mm_res_kernel(x_ref, w_ref, s_ref, b_ref, r_ref, o_ref, acc_ref, *, act):
    k = pl.program_id(2)

    @pl.when(k == 0)
    def _():
        acc_ref[...] = jnp.zeros_like(acc_ref)

    acc_ref[...] += jnp.dot(x_ref[...], w_ref[...],
                            preferred_element_type=jnp.float32)

    @pl.when(k == pl.num_programs(2) - 1)
    def _():
        y = (acc_ref[...] * s_ref[...] + b_ref[...]
             + r_ref[...].astype(jnp.float32))
        o_ref[...] = _apply_act(y, act).astype(o_ref.dtype)


def matmul_bn_act(x, w, scale, bias, residual=None, act="none",
                  out_dtype=jnp.bfloat16):
    """y = act((x @ w) * scale + bias [+ residual]); x:[M,K], w:[K,N]."""
    M, K = x.shape
    N = w.shape[-1]
    TM = 256 if M > 256 else _round_up(M, 8)
    TN = 256 if N > 256 else _round_up(N, 128)
    TK = 512 if K > 512 else _round_up(K, 128)
    Mp, Np, Kp = _round_up(M, TM), _round_up(N, TN), _round_up(K, TK)

    xb = x.astype(jnp.bfloat16)
    wb = w.astype(jnp.bfloat16)
    if (Mp, Kp) != (M, K):
        xb = jnp.pad(xb, ((0, Mp - M), (0, Kp - K)))
    if (Kp, Np) != (K, N):
        wb = jnp.pad(wb, ((0, Kp - K), (0, Np - N)))
    sp = jnp.pad(scale.astype(jnp.float32), (0, Np - N)).reshape(1, Np)
    bp = jnp.pad(bias.astype(jnp.float32), (0, Np - N)).reshape(1, Np)

    grid = (Mp // TM, Np // TN, Kp // TK)
    x_spec = pl.BlockSpec((TM, TK), lambda i, j, k: (i, k))
    w_spec = pl.BlockSpec((TK, TN), lambda i, j, k: (k, j))
    v_spec = pl.BlockSpec((1, TN), lambda i, j, k: (0, j))
    r_spec = pl.BlockSpec((TM, TN), lambda i, j, k: (i, j))
    o_spec = pl.BlockSpec((TM, TN), lambda i, j, k: (i, j))
    cparams = pltpu.CompilerParams(
        dimension_semantics=("parallel", "parallel", "arbitrary"),
        vmem_limit_bytes=_VMEM_LIMIT)

    if residual is None:
        out = pl.pallas_call(
            functools.partial(_mm_kernel, act=act),
            out_shape=jax.ShapeDtypeStruct((Mp, Np), out_dtype),
            grid_spec=pltpu.PrefetchScalarGridSpec(
                num_scalar_prefetch=0, grid=grid,
                in_specs=[x_spec, w_spec, v_spec, v_spec],
                out_specs=o_spec,
                scratch_shapes=[pltpu.VMEM((TM, TN), jnp.float32)]),
            compiler_params=cparams,
        )(xb, wb, sp, bp)
    else:
        rp = residual
        if rp.shape != (Mp, Np):
            rp = jnp.pad(rp, ((0, Mp - M), (0, Np - N)))
        out = pl.pallas_call(
            functools.partial(_mm_res_kernel, act=act),
            out_shape=jax.ShapeDtypeStruct((Mp, Np), out_dtype),
            grid_spec=pltpu.PrefetchScalarGridSpec(
                num_scalar_prefetch=0, grid=grid,
                in_specs=[x_spec, w_spec, v_spec, v_spec, r_spec],
                out_specs=o_spec,
                scratch_shapes=[pltpu.VMEM((TM, TN), jnp.float32)]),
            compiler_params=cparams,
        )(xb, wb, sp, bp, rp)

    if (Mp, Np) != (M, N):
        out = out[:M, :N]
    return out


# ---------------------------------------------------------------------------
# Direct (im2col-free) 3x3 stride-1 conv, padding == dilation
# ---------------------------------------------------------------------------
def _dconv3_kernel(x_ref, w_ref, s_ref, b_ref, o_ref, acc_ref, *, act, dil, wo):
    ky = pl.program_id(1)
    kc = pl.program_id(2)

    @pl.when(jnp.logical_and(ky == 0, kc == 0))
    def _():
        acc_ref[...] = jnp.zeros_like(acc_ref)

    for kx in range(3):                                   # static unrolled taps
        xs = x_ref[0, 0, kx * dil:kx * dil + wo, :]       # (Wo, TKc)
        acc_ref[...] += jnp.dot(xs, w_ref[0, kx],
                                preferred_element_type=jnp.float32)

    @pl.when(jnp.logical_and(ky == 2, kc == pl.num_programs(2) - 1))
    def _():
        y = acc_ref[...] * s_ref[...] + b_ref[...]
        o_ref[...] = _apply_act(y, act).astype(o_ref.dtype)[None, None]


def conv3x3_direct(x, w, scale, bias, *, dilation=1, act="none"):
    """3x3 conv, stride 1, padding == dilation. x: NHWC, w: (3,3,Cin,Cout)."""
    N, H, W, Cin = x.shape
    Cout = w.shape[-1]
    d = dilation
    xp = jnp.pad(x.astype(jnp.bfloat16), ((0, 0), (d, d), (d, d), (0, 0)))
    Wp = W + 2 * d
    TKc = 512 if Cin > 512 else Cin
    assert Cin % TKc == 0
    KC = Cin // TKc
    wb = w.astype(jnp.bfloat16)
    sp = scale.astype(jnp.float32).reshape(1, Cout)
    bp = bias.astype(jnp.float32).reshape(1, Cout)

    return pl.pallas_call(
        functools.partial(_dconv3_kernel, act=act, dil=d, wo=W),
        out_shape=jax.ShapeDtypeStruct((N, H, W, Cout), jnp.bfloat16),
        grid_spec=pltpu.PrefetchScalarGridSpec(
            num_scalar_prefetch=0,
            grid=(N * H, 3, KC),
            in_specs=[
                pl.BlockSpec((1, 1, Wp, TKc),
                             lambda m, ky, kc: (m // H, (m % H) + ky * d, 0, kc)),
                pl.BlockSpec((1, 3, TKc, Cout),
                             lambda m, ky, kc: (ky, 0, kc, 0)),
                pl.BlockSpec((1, Cout), lambda m, ky, kc: (0, 0)),
                pl.BlockSpec((1, Cout), lambda m, ky, kc: (0, 0)),
            ],
            out_specs=pl.BlockSpec((1, 1, W, Cout),
                                   lambda m, ky, kc: (m // H, m % H, 0, 0)),
            scratch_shapes=[pltpu.VMEM((W, Cout), jnp.float32)]),
        compiler_params=pltpu.CompilerParams(
            dimension_semantics=("parallel", "arbitrary", "arbitrary"),
            vmem_limit_bytes=_VMEM_LIMIT),
    )(xp, wb, sp, bp)


# ---------------------------------------------------------------------------
# Strided 3x3 convs (stem conv1, layer2.0 conv2) via im2col + fused matmul
# ---------------------------------------------------------------------------
def _im2col(x, ksize, stride, padding, dilation):
    N, H, W, C = x.shape
    Ho = (H + 2 * padding - dilation * (ksize - 1) - 1) // stride + 1
    Wo = (W + 2 * padding - dilation * (ksize - 1) - 1) // stride + 1
    xp = jnp.pad(x, ((0, 0), (padding, padding), (padding, padding), (0, 0)))
    cols = []
    for ky in range(ksize):
        for kx in range(ksize):
            y0 = ky * dilation
            x0 = kx * dilation
            cols.append(xp[:, y0:y0 + stride * (Ho - 1) + 1:stride,
                              x0:x0 + stride * (Wo - 1) + 1:stride, :])
    cols = jnp.concatenate(cols, axis=-1)
    return cols.reshape(N * Ho * Wo, ksize * ksize * C), (N, Ho, Wo)


def conv3x3_im2col(x, w, scale, bias, *, stride, padding, dilation=1, act="none"):
    # TODO(synk): only used for the two stride-2 3x3 convs; all stride-1 3x3
    #             convs use the direct (im2col-free) kernel above.
    cols, (N, Ho, Wo) = _im2col(x.astype(jnp.bfloat16), 3, stride, padding,
                                dilation)
    Cout = w.shape[-1]
    y = matmul_bn_act(cols, w.reshape(-1, Cout), scale, bias, act=act)
    return y.reshape(N, Ho, Wo, Cout)


def conv1x1_bn_act(x, w, scale, bias, *, stride=1, act="none", residual=None,
                   out_dtype=jnp.bfloat16):
    if stride > 1:
        x = x[:, ::stride, ::stride, :]
    N, H, W, C = x.shape
    Cout = w.shape[-1]
    res = None if residual is None else residual.reshape(N * H * W, Cout)
    y = matmul_bn_act(x.reshape(N * H * W, C), w.reshape(C, Cout), scale, bias,
                      residual=res, act=act, out_dtype=out_dtype)
    return y.reshape(N, H, W, Cout)


# ---------------------------------------------------------------------------
# MaxPool2d(kernel=3, stride=2, padding=1, ceil_mode=True)  (tiled)
# ---------------------------------------------------------------------------
def _max9_kernel(t_ref, o_ref):
    m = t_ref[0]
    for i in range(1, 9):
        m = jnp.maximum(m, t_ref[i])
    o_ref[...] = m


def maxpool_3x3_s2_ceil(x):
    N, H, W, C = x.shape

    def out_size(n):
        ho = -(-(n + 2 - 3) // 2) + 1          # ceil mode
        if (ho - 1) * 2 >= n + 1:              # drop window starting in right pad
            ho -= 1
        return ho

    Ho, Wo = out_size(H), out_size(W)
    pad_h = (Ho - 1) * 2 + 3 - (H + 1)
    pad_w = (Wo - 1) * 2 + 3 - (W + 1)
    xp = jnp.pad(x, ((0, 0), (1, pad_h), (1, pad_w), (0, 0)),
                 constant_values=-jnp.inf)
    taps = []
    for ky in range(3):
        for kx in range(3):
            taps.append(xp[:, ky:ky + 2 * (Ho - 1) + 1:2,
                              kx:kx + 2 * (Wo - 1) + 1:2, :])
    M = N * Ho * Wo
    t = jnp.stack(taps, axis=0).reshape(9, M, C)
    TM = 512 if M > 512 else _round_up(M, 8)
    Mp = _round_up(M, TM)
    if Mp != M:
        t = jnp.pad(t, ((0, 0), (0, Mp - M), (0, 0)))
    out = pl.pallas_call(
        _max9_kernel,
        out_shape=jax.ShapeDtypeStruct((Mp, C), x.dtype),
        grid_spec=pltpu.PrefetchScalarGridSpec(
            num_scalar_prefetch=0, grid=(Mp // TM,),
            in_specs=[pl.BlockSpec((9, TM, C), lambda i: (0, i, 0))],
            out_specs=pl.BlockSpec((TM, C), lambda i: (i, 0))),
        compiler_params=pltpu.CompilerParams(
            dimension_semantics=("parallel",),
            vmem_limit_bytes=_VMEM_LIMIT),
    )(t)
    return out[:M].reshape(N, Ho, Wo, C)


# ---------------------------------------------------------------------------
# Global average pool (AdaptiveAvgPool2d((1,1))), tiled over the HW reduction
# ---------------------------------------------------------------------------
def _gap_kernel(x_ref, o_ref, acc_ref, *, inv_hw):
    k = pl.program_id(0)

    @pl.when(k == 0)
    def _():
        acc_ref[...] = jnp.zeros_like(acc_ref)

    acc_ref[...] += jnp.sum(x_ref[...].astype(jnp.float32), axis=1)

    @pl.when(k == pl.num_programs(0) - 1)
    def _():
        o_ref[...] = acc_ref[...] * inv_hw


def global_avg_pool(x):
    N, H, W, C = x.shape
    HW = H * W
    xf = x.reshape(N, HW, C)
    T = 512 if HW > 512 else _round_up(HW, 8)
    HWp = _round_up(HW, T)
    if HWp != HW:
        xf = jnp.pad(xf, ((0, 0), (0, HWp - HW), (0, 0)))
    return pl.pallas_call(
        functools.partial(_gap_kernel, inv_hw=1.0 / HW),
        out_shape=jax.ShapeDtypeStruct((N, C), jnp.float32),
        grid_spec=pltpu.PrefetchScalarGridSpec(
            num_scalar_prefetch=0, grid=(HWp // T,),
            in_specs=[pl.BlockSpec((N, T, C), lambda k: (0, k, 0))],
            out_specs=pl.BlockSpec((N, C), lambda k: (0, 0)),
            scratch_shapes=[pltpu.VMEM((N, C), jnp.float32)]),
        compiler_params=pltpu.CompilerParams(
            dimension_semantics=("arbitrary",),
            vmem_limit_bytes=_VMEM_LIMIT),
    )(xf)


# ---------------------------------------------------------------------------
# Parameter construction (deterministic, synthetic)
# ---------------------------------------------------------------------------
class ParamGen:
    def __init__(self, seed=0):
        self.key = jax.random.PRNGKey(seed)

    def _next(self):
        self.key, sub = jax.random.split(self.key)
        return sub

    def conv(self, kh, kw, cin, cout):
        std = (2.0 / (kh * kw * cin)) ** 0.5
        return jax.random.normal(self._next(), (kh, kw, cin, cout),
                                 jnp.float32) * std

    def bias(self, c):
        return jax.random.normal(self._next(), (c,), jnp.float32) * 0.01

    def bn(self, c, eps=1e-5):
        gamma = jnp.ones((c,), jnp.float32)
        beta = jnp.zeros((c,), jnp.float32)
        scale = gamma / jnp.sqrt(1.0 + eps)   # running_mean=0, running_var=1
        return scale, beta


def build_params(num_classes=19, layers=(1, 1, 1, 1)):
    pg = ParamGen(0)
    P = {}
    P['conv1'] = pg.conv(3, 3, 3, 64);   P['bn1'] = pg.bn(64)
    P['conv2'] = pg.conv(3, 3, 64, 64);  P['bn2'] = pg.bn(64)
    P['conv3'] = pg.conv(3, 3, 64, 128); P['bn3'] = pg.bn(128)

    expansion = 4

    def make_layer(inplanes, planes, blocks, stride=1, dilation=1, multi_grid=1):
        blist = []
        for i in range(blocks):
            mg = multi_grid[i % len(multi_grid)] if isinstance(multi_grid, tuple) else 1
            bstride = stride if i == 0 else 1
            bp = {
                'w1': pg.conv(1, 1, inplanes, planes), 'bn1': pg.bn(planes),
                'w2': pg.conv(3, 3, planes, planes),   'bn2': pg.bn(planes),
                'w3': pg.conv(1, 1, planes, planes * expansion),
                'bn3': pg.bn(planes * expansion),
                'stride': bstride, 'dil': dilation * mg, 'pad': dilation * mg,
            }
            if i == 0 and (stride != 1 or inplanes != planes * expansion):
                bp['dw'] = pg.conv(1, 1, inplanes, planes * expansion)
                bp['dbn'] = pg.bn(planes * expansion)
            blist.append(bp)
            inplanes = planes * expansion
        return blist, inplanes

    inplanes = 128
    P['layer1'], inplanes = make_layer(inplanes, 64, layers[0])
    P['layer2'], inplanes = make_layer(inplanes, 128, layers[1], stride=2)
    P['layer3'], inplanes = make_layer(inplanes, 256, layers[2], stride=1, dilation=2)
    P['layer4'], inplanes = make_layer(inplanes, 512, layers[3], stride=1,
                                       dilation=4, multi_grid=(1, 1, 1))

    inner, outf = 256, 512
    P['aspp'] = {
        'c1_w': pg.conv(1, 1, 2048, inner), 'c1_bn': pg.bn(inner),
        'c2_w': pg.conv(1, 1, 2048, inner), 'c2_bn': pg.bn(inner),
        'c3_w': pg.conv(3, 3, 2048, inner), 'c3_bn': pg.bn(inner),
        'c4_w': pg.conv(3, 3, 2048, inner), 'c4_bn': pg.bn(inner),
        'c5_w': pg.conv(3, 3, 2048, inner), 'c5_bn': pg.bn(inner),
        'bot_w': pg.conv(1, 1, inner * 5, outf), 'bot_bn': pg.bn(outf),
    }
    P['head_cls_w'] = pg.conv(1, 1, outf, num_classes)
    P['head_cls_b'] = pg.bias(num_classes)

    P['dsn_w1'] = pg.conv(3, 3, 1024, 512)
    P['dsn_b1'] = pg.bias(512)
    P['dsn_bn1'] = pg.bn(512)
    P['dsn_w2'] = pg.conv(1, 1, 512, num_classes)
    P['dsn_b2'] = pg.bias(num_classes)
    return P


# ---------------------------------------------------------------------------
# Model forward
# ---------------------------------------------------------------------------
def bottleneck(x, p):
    out = conv1x1_bn_act(x, p['w1'], *p['bn1'], act='relu')
    if p['stride'] == 1:
        out = conv3x3_direct(out, p['w2'], *p['bn2'], dilation=p['dil'],
                             act='relu')
    else:
        out = conv3x3_im2col(out, p['w2'], *p['bn2'], stride=p['stride'],
                             padding=p['pad'], dilation=p['dil'], act='relu')
    if 'dw' in p:
        residual = conv1x1_bn_act(x, p['dw'], *p['dbn'], stride=p['stride'],
                                  act='none')
    else:
        residual = x
    # out = relu(bn3(conv3(out)) + residual), fused inside the Pallas kernel
    out = conv1x1_bn_act(out, p['w3'], *p['bn3'], act='relu', residual=residual)
    return out


def forward(P, x_nchw):
    x = jnp.transpose(x_nchw, (0, 2, 3, 1)).astype(jnp.bfloat16)  # NCHW -> NHWC

    x = conv3x3_im2col(x, P['conv1'], *P['bn1'], stride=2, padding=1, act='relu')
    x = conv3x3_direct(x, P['conv2'], *P['bn2'], dilation=1, act='relu')
    x = conv3x3_direct(x, P['conv3'], *P['bn3'], dilation=1, act='relu')
    x = maxpool_3x3_s2_ceil(x)

    for bp in P['layer1']:
        x = bottleneck(x, bp)
    for bp in P['layer2']:
        x = bottleneck(x, bp)
    for bp in P['layer3']:
        x = bottleneck(x, bp)

    # DSN auxiliary head (from layer3 output)
    ds, db = P['dsn_bn1']
    x_dsn = conv3x3_direct(x, P['dsn_w1'], ds, P['dsn_b1'] * ds + db,
                           dilation=1, act='leaky')
    nc = P['dsn_w2'].shape[-1]
    x_dsn = conv1x1_bn_act(x_dsn, P['dsn_w2'], jnp.ones((nc,), jnp.float32),
                           P['dsn_b2'], act='none', out_dtype=jnp.float32)

    for bp in P['layer4']:
        x = bottleneck(x, bp)

    # ASPP head
    a = P['aspp']
    N, H, W, _ = x.shape
    M = N * H * W
    g = global_avg_pool(x)                                       # [N, 2048] f32
    s1, b1 = a['c1_bn']
    f1 = matmul_bn_act(g, a['c1_w'].reshape(2048, 256), s1, b1, act='leaky',
                       out_dtype=jnp.float32)                    # [N, 256]
    feat2 = conv1x1_bn_act(x, a['c2_w'], *a['c2_bn'], act='leaky')
    feat3 = conv3x3_direct(x, a['c3_w'], *a['c3_bn'], dilation=12, act='leaky')
    feat4 = conv3x3_direct(x, a['c4_w'], *a['c4_bn'], dilation=24, act='leaky')
    feat5 = conv3x3_direct(x, a['c5_w'], *a['c5_bn'], dilation=36, act='leaky')

    # Bottleneck 1x1 conv over the (virtual) concat: split the 1280-row weight
    # into five 256-row blocks and accumulate with fused-residual matmuls so
    # the 1280-channel concat tensor is never materialized in HBM.
    bw = a['bot_w'].reshape(1280, 512)
    ones512 = jnp.ones((512,), jnp.float32)
    zeros512 = jnp.zeros((512,), jnp.float32)
    # bilinear upsample of a 1x1 map (align_corners=True) == broadcast
    part1 = matmul_bn_act(f1, bw[0:256], ones512, zeros512, act='none',
                          out_dtype=jnp.float32)                 # [N, 512]
    acc = jnp.broadcast_to(part1[:, None, :], (N, H * W, 512)).reshape(M, 512)
    acc = matmul_bn_act(feat2.reshape(M, 256), bw[256:512], ones512, zeros512,
                        residual=acc, act='none', out_dtype=jnp.float32)
    acc = matmul_bn_act(feat3.reshape(M, 256), bw[512:768], ones512, zeros512,
                        residual=acc, act='none', out_dtype=jnp.float32)
    acc = matmul_bn_act(feat4.reshape(M, 256), bw[768:1024], ones512, zeros512,
                        residual=acc, act='none', out_dtype=jnp.float32)
    bs, bb = a['bot_bn']
    bottle = matmul_bn_act(feat5.reshape(M, 256), bw[1024:1280], bs, bb,
                           residual=acc, act='leaky')            # [M, 512] bf16
    # TODO(synk): Dropout2d(0.1) treated as identity (eval mode).

    nc = P['head_cls_w'].shape[-1]
    seg = matmul_bn_act(bottle, P['head_cls_w'].reshape(512, nc),
                        jnp.ones((nc,), jnp.float32), P['head_cls_b'],
                        act='none', out_dtype=jnp.float32).reshape(N, H, W, nc)

    # back to NCHW to match PyTorch
    seg = jnp.transpose(seg, (0, 3, 1, 2))
    x_dsn = jnp.transpose(x_dsn, (0, 3, 1, 2))
    return [seg, x_dsn]


if __name__ == "__main__":
    key = jax.random.PRNGKey(0)
    x = jax.random.normal(key, (2, 3, 32, 32), jnp.float32)   # NCHW input
    params = build_params(num_classes=19, layers=(1, 1, 1, 1))
    out, out_dsn = forward(params, x)
    out = jax.block_until_ready(out)
    out_dsn = jax.block_until_ready(out_dsn)
    assert out.shape == (2, 19, 5, 5) and out_dsn.shape == (2, 19, 5, 5)
    print("KERNEL_OK")
</pallas_src>

<mosaic_0001>
module attributes {stable_mosaic.version = 11 : i64} {
  func.func @_mm_kernel(%arg0: i32, %arg1: i32, %arg2: i32, %arg3: memref<256x128xbf16, #tpu.memory_space<vmem>>, %arg4: memref<128x128xbf16, #tpu.memory_space<vmem>>, %arg5: memref<1x128xf32, #tpu.memory_space<vmem>>, %arg6: memref<1x128xf32, #tpu.memory_space<vmem>>, %arg7: memref<256x128xbf16, #tpu.memory_space<vmem>>, %arg8: memref<256x128xf32, #tpu.memory_space<vmem>>) attributes {dimension_semantics = [#tpu.dimension_semantics<parallel>, #tpu.dimension_semantics<parallel>, #tpu.dimension_semantics<arbitrary>], iteration_bounds = array<i64: 2, 1, 1>, scalar_prefetch = 0 : i64, scratch_operands = 1 : i64, tpu.core_type = #tpu.core_type<tc>, window_params = [{transform_indices = @transform_0, window_bounds = array<i64: 256, 128>}, {transform_indices = @transform_1, window_bounds = array<i64: 128, 128>}, {transform_indices = @transform_2, window_bounds = array<i64: 1, 128>}, {transform_indices = @transform_3, window_bounds = array<i64: 1, 128>}, {transform_indices = @transform_4, window_bounds = array<i64: 256, 128>}]} {
    %c0_i32 = arith.constant 0 : i32
    %0 = arith.cmpi eq, %arg2, %c0_i32 : i32
    %1 = arith.extui %0 : i1 to i32
    %c0_i32_0 = arith.constant 0 : i32
    %2 = arith.cmpi ne, %1, %c0_i32_0 : i32
    scf.if %2 {
      %cst_10 = arith.constant 0.000000e+00 : f32
      %12 = vector.broadcast %cst_10 : f32 to vector<256x128xf32>
      %c0_11 = arith.constant 0 : index
      %c0_12 = arith.constant 0 : index
      %13 = vector.load %arg8[%c0_11, %c0_12] : memref<256x128xf32, #tpu.memory_space<vmem>>, vector<256x128xf32>
      tpu.vector_store %arg8[%c0_11, %c0_12], %12 {strides = array<i32>} : memref<256x128xf32, #tpu.memory_space<vmem>>, vector<256x128xf32>,
    } else {
    }
    %c0 = arith.constant 0 : index
    %c0_1 = arith.constant 0 : index
    %3 = vector.load %arg8[%c0, %c0_1] : memref<256x128xf32, #tpu.memory_space<vmem>>, vector<256x128xf32>
    %c0_2 = arith.constant 0 : index
    %c0_3 = arith.constant 0 : index
    %4 = vector.load %arg3[%c0_2, %c0_3] : memref<256x128xbf16, #tpu.memory_space<vmem>>, vector<256x128xbf16>
    %c0_4 = arith.constant 0 : index
    %c0_5 = arith.constant 0 : index
    %5 = vector.load %arg4[%c0_4, %c0_5] : memref<128x128xbf16, #tpu.memory_space<vmem>>, vector<128x128xbf16>
    %cst = arith.constant dense<0.000000e+00> : vector<256x128xf32>
    %6 = tpu.matmul %4, %5, %cst {dimension_numbers = #tpu.dot_dimension_numbers<[1], [0], [0], [1], [0, 0, 1, 1], [], []>} : vector<256x128xbf16>, vector<128x128xbf16>, vector<256x128xf32> -> vector<256x128xf32>
    %7 = arith.addf %3, %6 : vector<256x128xf32>
    %c0_6 = arith.constant 0 : index
    %c0_7 = arith.constant 0 : index
    %8 = vector.load %arg8[%c0_6, %c0_7] : memref<256x128xf32, #tpu.memory_space<vmem>>, vector<256x128xf32>
    tpu.vector_store %arg8[%c0_6, %c0_7], %7 {strides = array<i32>} : memref<256x128xf32, #tpu.memory_space<vmem>>, vector<256x128xf32>,
    %c0_i32_8 = arith.constant 0 : i32
    %9 = arith.cmpi eq, %arg2, %c0_i32_8 : i32
    %10 = arith.extui %9 : i1 to i32
    %c0_i32_9 = arith.constant 0 : i32
    %11 = arith.cmpi ne, %10, %c0_i32_9 : i32
    scf.if %11 {
      %c0_10 = arith.constant 0 : index
      %c0_11 = arith.constant 0 : index
      %12 = vector.load %arg8[%c0_10, %c0_11] : memref<256x128xf32, #tpu.memory_space<vmem>>, vector<256x128xf32>
      %c0_12 = arith.constant 0 : index
      %c0_13 = arith.constant 0 : index
      %13 = vector.load %arg5[%c0_12, %c0_13] : memref<1x128xf32, #tpu.memory_space<vmem>>, vector<1x128xf32>
      %14 = vector.broadcast %13 : vector<1x128xf32> to vector<256x128xf32>
      %15 = arith.mulf %12, %14 : vector<256x128xf32>
      %c0_14 = arith.constant 0 : index
      %c0_15 = arith.constant 0 : index
      %16 = vector.load %arg6[%c0_14, %c0_15] : memref<1x128xf32, #tpu.memory_space<vmem>>, vector<1x128xf32>
      %17 = vector.broadcast %16 : vector<1x128xf32> to vector<256x128xf32>
      %18 = arith.addf %15, %17 : vector<256x128xf32>
      %cst_16 = arith.constant 0.000000e+00 : f32
      %19 = vector.broadcast %cst_16 : f32 to vector<256x128xf32>
      %20 = arith.maximumf %18, %19 : vector<256x128xf32>
      %21 = arith.truncf %20 : vector<256x128xf32> to vector<256x128xbf16>
      %c0_17 = arith.constant 0 : index
      %c0_18 = arith.constant 0 : index
      %22 = vector.load %arg7[%c0_17, %c0_18] : memref<256x128xbf16, #tpu.memory_space<vmem>>, vector<256x128xbf16>
      tpu.vector_store %arg7[%c0_17, %c0_18], %21 {strides = array<i32>} : memref<256x128xbf16, #tpu.memory_space<vmem>>, vector<256x128xbf16>,
    } else {
    }
    return
  }
  func.func @transform_0(%arg0: i32, %arg1: i32, %arg2: i32) -> (i32, i32) {
    %c0_i32 = arith.constant 0 : i32
    return %arg0, %arg2 : i32, i32
  }
  func.func @transform_1(%arg0: i32, %arg1: i32, %arg2: i32) -> (i32, i32) {
    %c0_i32 = arith.constant 0 : i32
    return %arg2, %arg1 : i32, i32
  }
  func.func @transform_2(%arg0: i32, %arg1: i32, %arg2: i32) -> (i32, i32) {
    %c0_i32 = arith.constant 0 : i32
    %c0_i32_0 = arith.constant 0 : i32
    return %c0_i32, %arg1 : i32, i32
  }
  func.func @transform_3(%arg0: i32, %arg1: i32, %arg2: i32) -> (i32, i32) {
    %c0_i32 = arith.constant 0 : i32
    %c0_i32_0 = arith.constant 0 : i32
    return %c0_i32, %arg1 : i32, i32
  }
  func.func @transform_4(%arg0: i32, %arg1: i32, %arg2: i32) -> (i32, i32) {
    %c0_i32 = arith.constant 0 : i32
    return %arg0, %arg1 : i32, i32
  }
}

</mosaic_0001>

<bundles_post_ra>
// kernel: tpu_custom_call.1
= control target key start
LH: loop header
LB: loop body
LE: loop exit
PB: predicated region body
PF: predicated region fallthrough
CT: control target
= control target key end

     0   :  { %s1847_s0 = inlined_call_operand.hbm [shape: bf16[512,128], index: 0, kind: input, shape index: {}]   ;;  %s1848_s1 = inlined_call_operand.hbm [shape: bf16[128,128], index: 1, kind: input, shape index: {}]   ;;  %s1849_s2 = inlined_call_operand.vmem [shape: f32[1,128], index: 2, kind: input, shape index: {}]   ;;  %s1850_s3 = inlined_call_operand.vmem [shape: f32[1,128], index: 3, kind: input, shape index: {}]   ;;  %s1851_s4 = inlined_call_operand.hbm [shape: bf16[512,128], index: 4, kind: output, shape index: {}]  }
   0x1   :  { %1855 = sst [smem:[#allocation13_spill]] %s1848_s1 }
   0x2   :  { %9 = vsyncpa [#allocation4], 0 }
   0x3   :  { %11 = vsyncpa [#allocation4 + $0x1], 0 }
   0x4   :  { %12 = vsyncpa [#allocation7], 0 }
   0x5   :  { %13 = vsyncpa [#allocation5], 0 }
   0x6   :  { %15 = vsyncpa [#allocation5 + $0x1], 0  ;;  %s1577_s15 = smov 0   ;;  %s1579_s16 = smov 0  }
   0x7   :  { %s1581_s17 = smov 0   ;;  %s1583_s18 = smov 0  }
   0x8   :  { %s1585_s19 = smov 0   ;;  %s1587_s20 = smov 0  }
   0x9 LB: > { %s1060_s21 = sadd.s32 4294967295, %s1545_s20   ;;  %s1061_s22 = sadd.s32 4294967294, %s1545_s20   ;;  %s1545_s20 = sphi %s1587_s20, %s21_s20   ;;  %s1541_s19 = sphi %s1585_s19, %s1872_s19   ;;  %s1537_s18 = sphi %s1583_s18, %s1871_s18   ;;  %s1533_s17 = sphi %s1581_s17, %s1870_s17   ;;  %s1529_s16 = sphi %s1579_s16, %s1869_s16   ;;  %s1525_s15 = sphi %s1577_s15, %s1868_s15  }
   0xa   : > { %p62_p0 = scmp.ne.s32.totalorder %s1529_s16, %s1525_s15  ;;  %p1611_p1 = scmp.eq.s32.totalorder %s1060_s21, 0 }
   0xb   : > { %p1615_p2 = scmp.eq.s32.totalorder %s1060_s21, 1  ;;  %p174_p3 = scmp.eq.s32.totalorder %s1061_s22, 1 }
   0xc   : > { %p1621_p4 = por %p1611_p1, %p62_p0  ;;  %p1062_p5 = scmp.ge.s32.totalorder %s1545_s20, 1 }
   0xd   : > { %p1626_p6 = por %p174_p3, %p62_p0  ;;  %p181_p7 = scmp.lt.s32.totalorder %s1545_s20, 3 }
   0xe   : > { %s1860_s1 = sld [smem:[#allocation13_spill]]  ;;  %s1547_s5 = smov [#allocation6]  }
   0xf   : > { %p1634_p8 = pnand %p1062_p5, %p181_p7  ;;  %s198_s6 = sshll.u32 %s1547_s5, 4  ;;  %s199_s6 = int_to_ptr.vmem [resolvable:$true] %s198_s6 }
  0x10   : > { %p1066_p11 = scmp.ge.s32.totalorder %s1545_s20, 2  ;;  %s1852_s7 = smov 64  }
  0x11   : > { %p1328_p9 = pneg %p1634_p8  ;;  %s1853_s8 = smov 4  }
  0x12   : > { %s40_s9 = sadd.s32 1, %s1541_s19  ;;  %s49_s10 = sadd.s32 1, %s1533_s17 }
  0x13   : > { %p1329_p10 = pnand %p1328_p9, %p1611_p1  ;;  %p42_p12 = scmp.ge.s32.totalorder %s40_s9, 2 }
  0x14   : > { %s196_s29 = sshll.u32 %s1860_s1, 4  ;;  %p56_p13 = scmp.ne.s32.totalorder %s1533_s17, %s1529_s16  ;;  %s197_s29 = int_to_ptr.hbm [resolvable:$true] %s196_s29 }
  0x15   : > { %1331 = dma.hbm_to_vmem [thread:$0]  (!%p1329_p10), %s197_s29, 1024, %s199_s6, [#allocation7], %s1852_s7, %s1852_s7, %s1853_s8  }
  0x16   : > { %p57_p0 = scmp.eq.s32.totalorder %s1545_s20, 0  ;;  %s1874_s9 = smov (%p42_p12, %s40_s9), 0 }
  0x17   : > { %1862 = sst [smem:[#allocation12_spill]] %s1874_s9  ;;  %p1659_p5 = por %p1615_p2, %p56_p13 }
  0x18   : > { %p1653_p3 = por %p57_p0, %p56_p13  ;;  %s44_s13 = ssub.s32 %s1541_s19, %s1874_s9 }
  0x19   : > { %p1341_p7 = scmp.lt.s32.totalorder %s1545_s20, 2  ;;  %p47_p9 = scmp.eq.s32.totalorder %s44_s13, 0 }
  0x1a   : > { %s224_s14 = sand.u32 1, %s1533_s17   ;;  %s1175_s27 = sshll.u32 %s1541_s19, 7 }
  0x1b   : > { %s1067_s21 = sshll.u32 %s224_s14, 7  ;;  %s234_s5 = scalar_lea.hbm %s1847_s0, %s1175_s27 }
  0x1c   : > { %s1668_s22 = scalar_select %p47_p9, %s1533_s17, %s49_s10  }
  0x1d   : > { %s228_s6 = scalar_lea.vmem [#allocation3], %s1067_s21  ;;  %s235_s24 = sshll.u32 %s234_s5, 4  ;;  %s236_s24 = int_to_ptr.hbm [resolvable:$true] %s235_s24 }
  0x1e   : > { %s237_s7 = sshll.u32 %s228_s6, 4  ;;  %p1333_p2 = pnand %p1341_p7, %p1653_p3  ;;  %s238_s7 = int_to_ptr.vmem [resolvable:$true] %s237_s7 }
  0x1f   : > { %s225_s8 = scalar_lea.sflag [#allocation4], %s224_s14  ;;  %s1865_s1 = smov 4  }
  0x20   : > { %s1866_s9 = smov 64   ;;  %249 = sbr.rel (%p1634_p8) target bundleno = 274 (0x112), region = 36 }
  0x21   : > { %1335 = dma.hbm_to_vmem [thread:$0]  (!%p1333_p2), %s236_s24, 2048, %s238_s7, %s225_s8, %s1866_s9, %s1866_s9, %s1865_s1  }
  0x22   : > { %s1682_s10 = sand.u32 (!%p1634_p8), 1, %s1529_s16  }
  0x23   : > { %s1071_s13 = sshll.u32 (!%p1634_p8), %s1682_s10, 7  ;;  %s252_s21 = scalar_lea.sflag (!%p1634_p8), [#allocation4], %s1682_s10 }
  0x24   : > { %s1688_s11 = scalar_lea.vmem (!%p1634_p8), [#allocation3], %s1071_s13 }
  0x25   : > { %1512 = dma.done.wait (%p1621_p4), %s252_s21, 2048  }
  0x26   : > { %1514 = vsyncadd (%p1621_p4), %s252_s21, 4294965248 }
  0x27   : > { %1516 = dma.done.wait (%p1611_p1), [#allocation7], 1024  }
  0x28   : > { %1518 = vsyncadd (%p1611_p1), [#allocation7], 4294966272  ;;  %v1199_v0 = vld [vmem:[#allocation6 + $0x38] sm:$0xff]  ;;  %v1198_v1 = vld [vmem:[#allocation6 + $0x30] sm:$0xff]  ;;  %s1740_s7 = scalar_lea.vmem [#allocation8], %s1071_s13  ;;  %s1200_s8 = sshll.u32 %s1537_s18, 7 }
  0x29   : > { %561 = vmatpush.bf16.msra.mxu0 %v1199_v0  ;;  %1296 = vmatpush.bf16.msra.mxu1 %v1199_v0  ;;  %v1197_v2 = vld [vmem:[#allocation6 + $0x28] sm:$0xff]  ;;  %v1196_v3 = vld [vmem:[#allocation6 + $0x20] sm:$0xff]  ;;  %v1195_v4 = vld [vmem:[#allocation6 + $0x18] sm:$0xff]  ;;  %s930_s27 = scalar_lea.hbm %s1851_s4, %s1200_s8  ;;  %s931_s18 = sshll.u32 %s1740_s7, 4  ;;  %s932_s18 = int_to_ptr.vmem [resolvable:$true] %s931_s18 }
  0x2a   : > { %1297 = vmatpush.bf16.msra.mxu2 %v1199_v0  ;;  %1298 = vmatpush.bf16.msra.mxu3 %v1199_v0  ;;  %v1194_v5 = vld [vmem:[#allocation6 + $0x10] sm:$0xff]  ;;  %v1193_v6 = vld [vmem:[#allocation6 + $0x8] sm:$0xff]  ;;  %v1192_v7 = vld [vmem:[#allocation6] sm:$0xff]  ;;  %s933_s28 = sshll.u32 %s930_s27, 4  ;;  %s918_s29 = scalar_lea.sflag [#allocation5], %s1682_s10  ;;  %s934_s28 = int_to_ptr.hbm [resolvable:$true] %s933_s28 }
  0x2b   : > { %v1176_v8 = vld [vmem:[%s1688_s11] sm:$0xff]  ;;  %v1177_v12 = vld [vmem:[%s1688_s11 + $0x8] sm:$0xff]  ;;  %v1178_v16 = vld [vmem:[%s1688_s11 + $0x10] sm:$0xff]  ;;  %s1473_s5 = sshra.s32 %s934_s28, 4  ;;  %s1479_s21 = scalar_lea.hbm %s1851_s4, 256  ;;  %s1474_s5 = int_to_ptr.hbm [resolvable:$true] %s1473_s5 }
  0x2c   : > { %v1180_v9 = vld [vmem:[%s1688_s11 + $0x20] sm:$0xff]  ;;  %v1181_v13 = vld [vmem:[%s1688_s11 + $0x28] sm:$0xff]  ;;  %v1182_v17 = vld [vmem:[%s1688_s11 + $0x30] sm:$0xff]  ;;  %s1475_s6 = scalar_lea.hbm %s1474_s5, 128  ;;  %p1480_p10 = scmp.lt.s32.totalorder %s1474_s5, %s1851_s4 }
  0x2d   : > { %562 = vmatpush.bf16.msra.mxu0 %v1198_v1  ;;  %1299 = vmatpush.bf16.msra.mxu1 %v1198_v1  ;;  %v1184_v10 = vld [vmem:[%s1688_s11 + $0x40] sm:$0xff]  ;;  %v1185_v14 = vld [vmem:[%s1688_s11 + $0x48] sm:$0xff]  ;;  %v1186_v18 = vld [vmem:[%s1688_s11 + $0x50] sm:$0xff]  ;;  %p1476_p1 = scmp.ne.s32.totalorder %s1474_s5, %s1475_s6  ;;  %p1481_p12 = scmp.lt.s32.totalorder %s1479_s21, %s1475_s6 }
  0x2e   : > { %1300 = vmatpush.bf16.msra.mxu2 %v1198_v1  ;;  %1301 = vmatpush.bf16.msra.mxu3 %v1198_v1  ;;  %v1188_v11 = vld [vmem:[%s1688_s11 + $0x60] sm:$0xff]  ;;  %v1189_v15 = vld [vmem:[%s1688_s11 + $0x68] sm:$0xff]  ;;  %v1190_v19 = vld [vmem:[%s1688_s11 + $0x70] sm:$0xff] }
  0x2f   : > { %v1179_v20 = vld [vmem:[%s1688_s11 + $0x18] sm:$0xff]  ;;  %v1717_v26 = vld [vmem:[%s1849_s2] ss:$0 sm:$0xff]  ;;  %p1477_p4 = pnand %p1476_p1, %p1659_p5  ;;  %p1482_p13 = por %p1481_p12, %p1480_p10 }
  0x30   : > { %v1183_v21 = vld [vmem:[%s1688_s11 + $0x38] sm:$0xff]  ;;  %v1723_v28 = vld [vmem:[%s1850_s3] ss:$0 sm:$0xff] }
  0x31   : > { %563 = vmatpush.bf16.msra.mxu0 %v1197_v2  ;;  %1302 = vmatpush.bf16.msra.mxu1 %v1197_v2  ;;  %v1187_v22 = vld [vmem:[%s1688_s11 + $0x58] sm:$0xff]  ;;  %p1478_p8 = pneg %p1477_p4 }
  0x32   : > { %1303 = vmatpush.bf16.msra.mxu2 %v1197_v2  ;;  %1304 = vmatpush.bf16.msra.mxu3 %v1197_v2  ;;  %v1191_v23 = vld [vmem:[%s1688_s11 + $0x78] sm:$0xff] }
  0x33   : > { %p1483_p0 = pnand %p1482_p13, %p1478_p8 }
  0x35   : > { %564 = vmatpush.bf16.msra.mxu0 %v1196_v3  ;;  %1305 = vmatpush.bf16.msra.mxu1 %v1196_v3 }
  0x36   : > { %1306 = vmatpush.bf16.msra.mxu2 %v1196_v3  ;;  %1307 = vmatpush.bf16.msra.mxu3 %v1196_v3 }
  0x39   : > { %565 = vmatpush.bf16.msra.mxu0 %v1195_v4  ;;  %1308 = vmatpush.bf16.msra.mxu1 %v1195_v4 }
  0x3a   : > { %1309 = vmatpush.bf16.msra.mxu2 %v1195_v4  ;;  %1310 = vmatpush.bf16.msra.mxu3 %v1195_v4 }
  0x3d   : > { %566 = vmatpush.bf16.msra.mxu0 %v1194_v5  ;;  %1311 = vmatpush.bf16.msra.mxu1 %v1194_v5 }
  0x3e   : > { %1312 = vmatpush.bf16.msra.mxu2 %v1194_v5  ;;  %1313 = vmatpush.bf16.msra.mxu3 %v1194_v5 }
  0x41   : > { %567 = vmatpush.bf16.msra.mxu0 %v1193_v6  ;;  %1314 = vmatpush.bf16.msra.mxu1 %v1193_v6 }
  0x42   : > { %1315 = vmatpush.bf16.msra.mxu2 %v1193_v6  ;;  %1316 = vmatpush.bf16.msra.mxu3 %v1193_v6 }
  0x45   : > { %568 = vmatpush.bf16.msra.mxu0 %v1192_v7  ;;  %1317 = vmatpush.bf16.msra.mxu1 %v1192_v7 }
  0x46   : > { %1318 = vmatpush.bf16.msra.mxu2 %v1192_v7  ;;  %1319 = vmatpush.bf16.msra.mxu3 %v1192_v7 }
  0x48   : > { %569 = vmatmul.bf16.vlgmr.msra.gmra.mxu0 %v1176_v8  ;;  %589 = vmatmul.bf16.vlgmr.msra.gmra.mxu1 %v1180_v9 }
  0x49   : > { %609 = vmatmul.bf16.vlgmr.msra.gmra.mxu2 %v1184_v10  ;;  %629 = vmatmul.bf16.vlgmr.msra.gmra.mxu3 %v1188_v11 }
  0x58   : > { %574 = vmatmul.bf16.gmra.mxu0 %v1177_v12  ;;  %594 = vmatmul.bf16.gmra.mxu1 %v1181_v13 }
  0x59   : > { %614 = vmatmul.bf16.gmra.mxu2 %v1185_v14  ;;  %634 = vmatmul.bf16.gmra.mxu3 %v1189_v15 }
  0x68   : > { %579 = vmatmul.bf16.gmra.mxu0 %v1178_v16  ;;  %599 = vmatmul.bf16.gmra.mxu1 %v1182_v17 }
  0x69   : > { %619 = vmatmul.bf16.gmra.mxu2 %v1186_v18  ;;  %639 = vmatmul.bf16.gmra.mxu3 %v1190_v19 }
  0x78   : > { %584 = vmatmul.bf16.gmra.mxu0 %v1179_v20  ;;  %604 = vmatmul.bf16.gmra.mxu1 %v1183_v21 }
  0x79   : > { %624 = vmatmul.bf16.gmra.mxu2 %v1187_v22  ;;  %644 = vmatmul.bf16.gmra.mxu3 %v1191_v23 }
  0xc5   : > { %v570_v24 = vpop.f32.mrf.mxu0  ;;  %v590_v25 = vpop.f32.mrf.mxu1 }
  0xc6   : > { %v753_v27 = vmul.f32 %v1717_v26, %v570_v24  ;;  %v761_v29 = vmul.f32 %v1717_v26, %v590_v25 }
  0xc8   : > { %v789_v34 = vadd.f32 %v1723_v28, %v753_v27  ;;  %v797_v35 = vadd.f32 %v1723_v28, %v761_v29 }
  0xca   : > { %v821_v42 = vmax.f32 %v789_v34, 0.0  ;;  %v829_v43 = vmax.f32 %v797_v35, 0.0 }
  0xcc   : > { %v610_v30 = vpop.f32.mrf.mxu2  ;;  %v630_v31 = vpop.f32.mrf.mxu3 }
  0xcd   : > { %v572_v32 = vpop.f32.mrf.mxu0  ;;  %v592_v33 = vpop.f32.mrf.mxu1  ;;  %v769_v40 = vmul.f32 %v1717_v26, %v610_v30  ;;  %v777_v41 = vmul.f32 %v1717_v26, %v630_v31 }
  0xce   : > { %v754_v36 = vmul.f32 %v1717_v26, %v572_v32  ;;  %v762_v37 = vmul.f32 %v1717_v26, %v592_v33 }
  0xcf   : > { %v805_v50 = vadd.f32 %v1723_v28, %v769_v40  ;;  %v813_v51 = vadd.f32 %v1723_v28, %v777_v41 }
  0xd0   : > { %v790_v38 = vadd.f32 %v1723_v28, %v754_v36  ;;  %v798_v39 = vadd.f32 %v1723_v28, %v762_v37 }
  0xd1   : > { %v837_v58 = vmax.f32 %v805_v50, 0.0  ;;  %v845_v59 = vmax.f32 %v813_v51, 0.0 }
  0xd2   : > { %v822_v44 = vmax.f32 %v790_v38, 0.0  ;;  %v830_v45 = vmax.f32 %v798_v39, 0.0 }
  0xd4   : > { %v1204_v46 = vpack.c.bf16 %v822_v44, %v821_v42  ;;  %v1224_v47 = vpack.c.bf16 %v830_v45, %v829_v43  ;;  %v612_v48 = vpop.f32.mrf.mxu2  ;;  %v632_v49 = vpop.f32.mrf.mxu3 }
  0xd5   : > { %v770_v52 = vmul.f32 %v1717_v26, %v612_v48  ;;  %v778_v53 = vmul.f32 %v1717_v26, %v632_v49  ;;  %v575_v54 = vpop.f32.mrf.mxu0  ;;  %v595_v55 = vpop.f32.mrf.mxu1 }
  0xd6   : > { %1205 = vst [vmem:[%s1740_s7] sm:$0xff] %v1204_v46   ;;  %v755_v62 = vmul.f32 %v1717_v26, %v575_v54  ;;  %v763_v63 = vmul.f32 %v1717_v26, %v595_v55 }
  0xd7   : > { %1284 = vst [vmem:[%s1740_s7 + $0x20] sm:$0xff] %v1224_v47   ;;  %v806_v56 = vadd.f32 %v1723_v28, %v770_v52  ;;  %v814_v57 = vadd.f32 %v1723_v28, %v778_v53 }
  0xd8   : > { %v791_v6 = vadd.f32 %v1723_v28, %v755_v62  ;;  %v799_v7 = vadd.f32 %v1723_v28, %v763_v63 }
  0xd9   : > { %v838_v60 = vmax.f32 %v806_v56, 0.0  ;;  %v846_v61 = vmax.f32 %v814_v57, 0.0 }
  0xda   : > { %v823_v14 = vmax.f32 %v791_v6, 0.0  ;;  %v831_v15 = vmax.f32 %v799_v7, 0.0 }
  0xdb   : > { %v1244_v0 = vpack.c.bf16 %v838_v60, %v837_v58  ;;  %v1264_v1 = vpack.c.bf16 %v846_v61, %v845_v59 }
  0xdc   : > { %v615_v2 = vpop.f32.mrf.mxu2  ;;  %v635_v3 = vpop.f32.mrf.mxu3 }
  0xdd   : > { %1288 = vst [vmem:[%s1740_s7 + $0x40] sm:$0xff] %v1244_v0   ;;  %v577_v4 = vpop.f32.mrf.mxu0  ;;  %v597_v5 = vpop.f32.mrf.mxu1  ;;  %v771_v12 = vmul.f32 %v1717_v26, %v615_v2  ;;  %v779_v13 = vmul.f32 %v1717_v26, %v635_v3 }
  0xde   : > { %1292 = vst [vmem:[%s1740_s7 + $0x60] sm:$0xff] %v1264_v1   ;;  %v756_v8 = vmul.f32 %v1717_v26, %v577_v4  ;;  %v764_v9 = vmul.f32 %v1717_v26, %v597_v5 }
  0xdf   : > { %v807_v22 = vadd.f32 %v1723_v28, %v771_v12  ;;  %v815_v23 = vadd.f32 %v1723_v28, %v779_v13 }
  0xe0   : > { %v792_v10 = vadd.f32 %v1723_v28, %v756_v8  ;;  %v800_v11 = vadd.f32 %v1723_v28, %v764_v9 }
  0xe1   : > { %v839_v32 = vmax.f32 %v807_v22, 0.0  ;;  %v847_v33 = vmax.f32 %v815_v23, 0.0 }
  0xe2   : > { %v824_v16 = vmax.f32 %v792_v10, 0.0  ;;  %v832_v17 = vmax.f32 %v800_v11, 0.0 }
  0xe4   : > { %v1209_v18 = vpack.c.bf16 %v824_v16, %v823_v14  ;;  %v1229_v19 = vpack.c.bf16 %v832_v17, %v831_v15  ;;  %v617_v20 = vpop.f32.mrf.mxu2  ;;  %v637_v21 = vpop.f32.mrf.mxu3 }
  0xe5   : > { %v772_v24 = vmul.f32 %v1717_v26, %v617_v20  ;;  %v780_v25 = vmul.f32 %v1717_v26, %v637_v21  ;;  %v580_v27 = vpop.f32.mrf.mxu0  ;;  %v600_v29 = vpop.f32.mrf.mxu1 }
  0xe6   : > { %1281 = vst [vmem:[%s1740_s7 + $0x8] sm:$0xff] %v1209_v18   ;;  %v757_v36 = vmul.f32 %v1717_v26, %v580_v27  ;;  %v765_v37 = vmul.f32 %v1717_v26, %v600_v29 }
  0xe7   : > { %1285 = vst [vmem:[%s1740_s7 + $0x28] sm:$0xff] %v1229_v19   ;;  %v808_v30 = vadd.f32 %v1723_v28, %v772_v24  ;;  %v816_v31 = vadd.f32 %v1723_v28, %v780_v25 }
  0xe8   : > { %v793_v44 = vadd.f32 %v1723_v28, %v757_v36  ;;  %v801_v45 = vadd.f32 %v1723_v28, %v765_v37 }
  0xe9   : > { %v840_v34 = vmax.f32 %v808_v30, 0.0  ;;  %v848_v35 = vmax.f32 %v816_v31, 0.0 }
  0xea   : > { %v825_v52 = vmax.f32 %v793_v44, 0.0  ;;  %v833_v53 = vmax.f32 %v801_v45, 0.0 }
  0xeb   : > { %v1249_v38 = vpack.c.bf16 %v840_v34, %v839_v32  ;;  %v1269_v39 = vpack.c.bf16 %v848_v35, %v847_v33 }
  0xec   : > { %v620_v40 = vpop.f32.mrf.mxu2  ;;  %v640_v41 = vpop.f32.mrf.mxu3 }
  0xed   : > { %1289 = vst [vmem:[%s1740_s7 + $0x48] sm:$0xff] %v1249_v38   ;;  %v582_v42 = vpop.f32.mrf.mxu0  ;;  %v602_v43 = vpop.f32.mrf.mxu1  ;;  %v773_v50 = vmul.f32 %v1717_v26, %v620_v40  ;;  %v781_v51 = vmul.f32 %v1717_v26, %v640_v41 }
  0xee   : > { %1293 = vst [vmem:[%s1740_s7 + $0x68] sm:$0xff] %v1269_v39   ;;  %v758_v46 = vmul.f32 %v1717_v26, %v582_v42  ;;  %v766_v47 = vmul.f32 %v1717_v26, %v602_v43 }
  0xef   : > { %v809_v60 = vadd.f32 %v1723_v28, %v773_v50  ;;  %v817_v61 = vadd.f32 %v1723_v28, %v781_v51 }
  0xf0   : > { %v794_v48 = vadd.f32 %v1723_v28, %v758_v46  ;;  %v802_v49 = vadd.f32 %v1723_v28, %v766_v47 }
  0xf1   : > { %v841_v4 = vmax.f32 %v809_v60, 0.0  ;;  %v849_v5 = vmax.f32 %v817_v61, 0.0 }
  0xf2   : > { %v826_v54 = vmax.f32 %v794_v48, 0.0  ;;  %v834_v55 = vmax.f32 %v802_v49, 0.0 }
  0xf4   : > { %v1214_v56 = vpack.c.bf16 %v826_v54, %v825_v52  ;;  %v1234_v57 = vpack.c.bf16 %v834_v55, %v833_v53  ;;  %v622_v58 = vpop.f32.mrf.mxu2  ;;  %v642_v59 = vpop.f32.mrf.mxu3 }
  0xf5   : > { %v774_v62 = vmul.f32 %v1717_v26, %v622_v58  ;;  %v782_v63 = vmul.f32 %v1717_v26, %v642_v59  ;;  %v585_v0 = vpop.f32.mrf.mxu0  ;;  %v605_v1 = vpop.f32.mrf.mxu1 }
  0xf6   : > { %1282 = vst [vmem:[%s1740_s7 + $0x10] sm:$0xff] %v1214_v56   ;;  %v759_v8 = vmul.f32 %v1717_v26, %v585_v0  ;;  %v767_v9 = vmul.f32 %v1717_v26, %v605_v1 }
  0xf7   : > { %1286 = vst [vmem:[%s1740_s7 + $0x30] sm:$0xff] %v1234_v57   ;;  %v810_v2 = vadd.f32 %v1723_v28, %v774_v62  ;;  %v818_v3 = vadd.f32 %v1723_v28, %v782_v63 }
  0xf8   : > { %v795_v16 = vadd.f32 %v1723_v28, %v759_v8  ;;  %v803_v17 = vadd.f32 %v1723_v28, %v767_v9 }
  0xf9   : > { %v842_v6 = vmax.f32 %v810_v2, 0.0  ;;  %v850_v7 = vmax.f32 %v818_v3, 0.0 }
  0xfa   : > { %v827_v24 = vmax.f32 %v795_v16, 0.0  ;;  %v835_v25 = vmax.f32 %v803_v17, 0.0 }
  0xfb   : > { %v1254_v10 = vpack.c.bf16 %v842_v6, %v841_v4  ;;  %v1274_v11 = vpack.c.bf16 %v850_v7, %v849_v5 }
  0xfc   : > { %v625_v12 = vpop.f32.mrf.mxu2  ;;  %v645_v13 = vpop.f32.mrf.mxu3 }
  0xfd   : > { %1290 = vst [vmem:[%s1740_s7 + $0x50] sm:$0xff] %v1254_v10   ;;  %v587_v14 = vpop.f32.mrf.mxu0  ;;  %v607_v15 = vpop.f32.mrf.mxu1  ;;  %v775_v22 = vmul.f32 %v1717_v26, %v625_v12  ;;  %v783_v23 = vmul.f32 %v1717_v26, %v645_v13 }
  0xfe   : > { %1294 = vst [vmem:[%s1740_s7 + $0x70] sm:$0xff] %v1274_v11   ;;  %v760_v18 = vmul.f32 %v1717_v26, %v587_v14  ;;  %v768_v19 = vmul.f32 %v1717_v26, %v607_v15 }
  0xff   : > { %v811_v34 = vadd.f32 %v1723_v28, %v775_v22  ;;  %v819_v35 = vadd.f32 %v1723_v28, %v783_v23 }
 0x100   : > { %v796_v20 = vadd.f32 %v1723_v28, %v760_v18  ;;  %v804_v21 = vadd.f32 %v1723_v28, %v768_v19 }
 0x101   : > { %v843_v40 = vmax.f32 %v811_v34, 0.0  ;;  %v851_v41 = vmax.f32 %v819_v35, 0.0 }
 0x102   : > { %v828_v27 = vmax.f32 %v796_v20, 0.0  ;;  %v836_v29 = vmax.f32 %v804_v21, 0.0 }
 0x104   : > { %v1219_v30 = vpack.c.bf16 %v828_v27, %v827_v24  ;;  %v1239_v31 = vpack.c.bf16 %v836_v29, %v835_v25  ;;  %v627_v32 = vpop.f32.mrf.mxu2  ;;  %v647_v33 = vpop.f32.mrf.mxu3 }
 0x105   : > { %v776_v36 = vmul.f32 %v1717_v26, %v627_v32  ;;  %v784_v37 = vmul.f32 %v1717_v26, %v647_v33 }
 0x106   : > { %1283 = vst [vmem:[%s1740_s7 + $0x18] sm:$0xff] %v1219_v30  }
 0x107   : > { %1287 = vst [vmem:[%s1740_s7 + $0x38] sm:$0xff] %v1239_v31   ;;  %v812_v38 = vadd.f32 %v1723_v28, %v776_v36  ;;  %v820_v39 = vadd.f32 %v1723_v28, %v784_v37 }
 0x109   : > { %v844_v42 = vmax.f32 %v812_v38, 0.0  ;;  %v852_v26 = vmax.f32 %v820_v39, 0.0 }
 0x10b   : > { %v1259_v43 = vpack.c.bf16 %v844_v42, %v843_v40  ;;  %v1279_v44 = vpack.c.bf16 %v852_v26, %v851_v41 }
 0x10d   : > { %1291 = vst [vmem:[%s1740_s7 + $0x58] sm:$0xff] %v1259_v43  }
 0x10e   : > { %1295 = vst [vmem:[%s1740_s7 + $0x78] sm:$0xff] %v1279_v44  }
 0x10f   : > { %1486 = shalt.err (!%p1483_p0)
}
 0x110   : > { %s1550_s10 = smov 64   ;;  %s1551_s23 = smov 4  }
 0x111   : > { %1326 = dma.vmem_to_hbm [thread:$0]  (%p1659_p5), %s932_s18, 2048, %s934_s28, %s918_s29, %s1550_s10, %s1550_s10, %s1551_s23  }
 0x112 PF: > { %s948_s25 = sand.u32 1, %s1525_s15   ;;  %p1337_p3 = pnand %p1066_p11, %p1626_p6 }
 0x113   : > { %s949_s30 = scalar_lea.sflag [#allocation5], %s948_s25 }
 0x114   : > { %p1338_p7 = pneg %p1337_p3 }
 0x116   : > { %1520 = dma.done.wait (%p1338_p7), %s949_s30, 2048  }
 0x117   : > { %1522 = vsyncadd (%p1338_p7), %s949_s30, 4294965248  ;;  %s21_s20 = sadd.s32 1, %s1545_s20   ;;  %s1867_s12 = sld [smem:[#allocation12_spill]] }
 0x118   : > { %p18_p9 = scmp.ge.s32.totalorder %s21_s20, 4   ;;  %s1868_s15 = smov %s1529_s16 }
 0x119   : > { %s1869_s16 = smov %s1533_s17  ;;  %s1870_s17 = smov %s1668_s22 }
 0x11a   : > { %s1871_s18 = smov %s1541_s19  ;;  %20 = sbr.rel (!%p18_p9) target bundleno = 9 (0x9), region = 100 }
 0x11d   : > { %s1872_s19 = smov %s1867_s12 }
 0x11f   :  { %955 = vsyncpa [#allocation4], 1 }
 0x120   :  { %957 = vsyncpa [#allocation4 + $0x1], 1 }
 0x121   :  { %958 = vsyncpa [#allocation7], 1 }
 0x122   :  { %959 = vsyncpa [#allocation5], 1 }
 0x123   :  { %961 = vsyncpa [#allocation5 + $0x1], 1 }

</bundles_post_ra>
